<compile_context>
chip_gen: v7x
topology: tpu7x:2x2x1
jax: 0.10.0
libtpu: 0.0.40
codegen_flags: <defaults>
</compile_context>

<pallas_src>
import functools

import jax
import jax.numpy as jnp
from jax.experimental import pallas as pl
from jax.experimental.pallas import tpu as pltpu

LANES = 128
DEFAULT_BLOCK_ROWS = 1024  # (1024, 128) f32 tile = 512 KiB per input per buffer


def _pow(x, gamma):
    # static Python branch: integer gamma -> exact integer power (safe for
    # negative bases, matches torch.pow for integer exponents), otherwise
    # generic power (NaN for base < 0, same as torch).
    if float(gamma).is_integer():
        return jax.lax.integer_pow(x, int(gamma))
    return jnp.power(x, gamma)


def _focal_partial_kernel(x_ref, t_ref, a_ref, out_ref, *,
                          eps, gamma, valid_rows, block_rows):
    """One grid step: compute focal term on a (block_rows, 128) tile, mask the
    tail rows, reduce to an (8, 128) partial sum and store it in this block's
    output slot (no cross-step state -> grid axis is fully parallel)."""
    i = pl.program_id(0)

    x = x_ref[...].astype(jnp.float32)
    t = t_ref[...].astype(jnp.float32)
    a = a_ref[...].astype(jnp.float32)

    fl = -a * _pow(1.0 - x, gamma) * t * jnp.log(x + eps)

    # Mask rows past the true extent (last block may overhang the array).
    row = i * block_rows + jax.lax.broadcasted_iota(jnp.int32, fl.shape, 0)
    fl = jnp.where(row < valid_rows, fl, 0.0)

    # (block_rows, 128) -> (8, 128) partial: cheap VPU adds, no XLU full
    # reduce and no serial scalar accumulator in the inner loop.
    partial = fl.reshape(block_rows // 8, 8, LANES).sum(axis=0)
    out_ref[...] = partial


def focal_loss(inputs, targets, alpha, n_channels=10, gamma=2.0, eps=0.0001,
               block_rows=DEFAULT_BLOCK_ROWS):
    x = jnp.reshape(inputs, (-1,))
    t = jnp.reshape(targets, (-1,))
    n = x.shape[0]
    a = jnp.reshape(alpha, (-1,))[:n]

    # Only pad (tiny, < 128 elements) if N is not lane-aligned; padded
    # elements contribute exactly 0 (targets/alpha = 0, inputs = 1 keeps log
    # finite).  For lane-aligned N (the common case) no copy is made.
    lane_pad = (-n) % LANES
    if lane_pad:
        x = jnp.pad(x, (0, lane_pad), constant_values=1.0)
        t = jnp.pad(t, (0, lane_pad), constant_values=0.0)
        a = jnp.pad(a, (0, lane_pad), constant_values=0.0)

    rows = (n + lane_pad) // LANES
    x2 = x.reshape(rows, LANES)
    t2 = t.reshape(rows, LANES)
    a2 = a.reshape(rows, LANES)

    # Clamp the tile to the (8-aligned) problem size so small inputs do not
    # allocate oversized VMEM blocks; sweepable for large inputs.
    block_rows = int(max(8, min(block_rows, ((rows + 7) // 8) * 8)))
    num_blocks = pl.cdiv(rows, block_rows)

    tile = pl.BlockSpec((block_rows, LANES), lambda i: (i, 0))
    kernel = functools.partial(_focal_partial_kernel, eps=eps, gamma=gamma,
                               valid_rows=rows, block_rows=block_rows)

    partials = pl.pallas_call(
        kernel,
        out_shape=jax.ShapeDtypeStruct((num_blocks, 8, LANES), jnp.float32),
        grid_spec=pltpu.PrefetchScalarGridSpec(
            num_scalar_prefetch=0,
            grid=(num_blocks,),
            in_specs=[tile, tile, tile],
            # One lane-dense (8,128) partial-sum slot per block.
            out_specs=pl.BlockSpec((None, 8, LANES), lambda i: (i, 0, 0)),
        ),
        compiler_params=pltpu.CompilerParams(
            # No cross-step accumulator -> safe to shard across TensorCores
            # (v7x megacore); no effect on single-TC v5e/v6e.
            dimension_semantics=("parallel",)),
    )(x2, t2, a2)

    # Tiny final reduction (num_blocks * 1024 floats) + mean over the true N.
    total = jnp.sum(partials)
    return (total / jnp.float32(n)) * jnp.float32(n_channels)


def focal_loss_ref(inputs, targets, alpha, n_channels=10, gamma=2.0, eps=0.0001):
    x = jnp.reshape(inputs, (-1,)).astype(jnp.float32)
    t = jnp.reshape(targets, (-1,)).astype(jnp.float32)
    a = jnp.reshape(alpha, (-1,))[: x.shape[0]].astype(jnp.float32)
    fl = -a * (1.0 - x) ** gamma * t * jnp.log(x + eps)
    return jnp.mean(fl) * n_channels


if __name__ == "__main__":
    key = jax.random.PRNGKey(0)
    k1, k2, k3 = jax.random.split(key, 3)

    # small shapes consistent with a segmentation-style focal loss: NCHW probs
    B, C, H, W = 2, 4, 16, 16
    N = B * C * H * W

    inputs = jax.random.uniform(k1, (B, C, H, W), jnp.float32,
                                minval=0.01, maxval=0.99)
    targets = (jax.random.uniform(k2, (B, C, H, W)) > 0.5).astype(jnp.float32)
    alpha = jax.random.uniform(k3, (N,), jnp.float32, minval=0.1, maxval=1.0)

    out = focal_loss(inputs, targets, alpha, n_channels=10, gamma=2.0)
    out = jax.block_until_ready(out)

    ref = focal_loss_ref(inputs, targets, alpha, n_channels=10, gamma=2.0)
    assert jnp.allclose(out, ref, rtol=1e-5, atol=1e-5), (out, ref)

    print("KERNEL_OK")
</pallas_src>

<mosaic_0001>
module attributes {stable_mosaic.version = 11 : i64} {
  func.func @_focal_partial_kernel(%arg0: i32, %arg1: memref<16x128xf32, #tpu.memory_space<vmem>>, %arg2: memref<16x128xf32, #tpu.memory_space<vmem>>, %arg3: memref<16x128xf32, #tpu.memory_space<vmem>>, %arg4: memref<1x8x128xf32, #tpu.memory_space<vmem>>) attributes {dimension_semantics = [#tpu.dimension_semantics<parallel>], iteration_bounds = array<i64: 1>, scalar_prefetch = 0 : i64, scratch_operands = 0 : i64, tpu.core_type = #tpu.core_type<tc>, window_params = [{transform_indices = @transform_0, window_bounds = array<i64: 16, 128>}, {transform_indices = @transform_1, window_bounds = array<i64: 16, 128>}, {transform_indices = @transform_2, window_bounds = array<i64: 16, 128>}, {transform_indices = @transform_3, window_bounds = array<i64: 1, 8, 128>}]} {
    %c0 = arith.constant 0 : index
    %c0_0 = arith.constant 0 : index
    %0 = vector.load %arg1[%c0, %c0_0] : memref<16x128xf32, #tpu.memory_space<vmem>>, vector<16x128xf32>
    %c0_1 = arith.constant 0 : index
    %c0_2 = arith.constant 0 : index
    %1 = vector.load %arg2[%c0_1, %c0_2] : memref<16x128xf32, #tpu.memory_space<vmem>>, vector<16x128xf32>
    %c0_3 = arith.constant 0 : index
    %c0_4 = arith.constant 0 : index
    %2 = vector.load %arg3[%c0_3, %c0_4] : memref<16x128xf32, #tpu.memory_space<vmem>>, vector<16x128xf32>
    %cst = arith.constant 0.000000e+00 : f32
    %3 = vector.broadcast %cst : f32 to vector<16x128xf32>
    %4 = arith.subf %3, %2 : vector<16x128xf32>
    %cst_5 = arith.constant 1.000000e+00 : f32
    %5 = vector.broadcast %cst_5 : f32 to vector<16x128xf32>
    %6 = arith.subf %5, %0 : vector<16x128xf32>
    %7 = arith.mulf %6, %6 : vector<16x128xf32>
    %8 = arith.mulf %4, %7 : vector<16x128xf32>
    %9 = arith.mulf %8, %1 : vector<16x128xf32>
    %cst_6 = arith.constant 9.99999974E-5 : f32
    %10 = vector.broadcast %cst_6 : f32 to vector<16x128xf32>
    %11 = arith.addf %0, %10 : vector<16x128xf32>
    %12 = math.log %11 : vector<16x128xf32>
    %13 = arith.mulf %9, %12 : vector<16x128xf32>
    %c16_i32 = arith.constant 16 : i32
    %14 = arith.muli %arg0, %c16_i32 : i32
    %15 = tpu.iota {dimensions = array<i32: 0>} : vector<16x128xi32>
    %16 = vector.broadcast %14 : i32 to vector<16x128xi32>
    %17 = arith.addi %16, %15 : vector<16x128xi32>
    %c16_i32_7 = arith.constant 16 : i32
    %18 = vector.broadcast %c16_i32_7 : i32 to vector<16x128xi32>
    %19 = arith.cmpi slt, %17, %18 : vector<16x128xi32>
    %cst_8 = arith.constant 0.000000e+00 : f32
    %20 = vector.broadcast %cst_8 : f32 to vector<16x128xf32>
    %21 = arith.select %19, %13, %20 : vector<16x128xi1>, vector<16x128xf32>
    %22 = vector.shape_cast %21 : vector<16x128xf32> to vector<2x8x128xf32>
    %cst_9 = arith.constant dense<0.000000e+00> : vector<8x128xf32>
    %23 = vector.multi_reduction <add>, %22, %cst_9 [0] : vector<2x8x128xf32> to vector<8x128xf32>
    %c0_10 = arith.constant 0 : index
    %c0_11 = arith.constant 0 : index
    %c0_12 = arith.constant 0 : index
    %24 = vector.load %arg4[%c0_10, %c0_11, %c0_12] : memref<1x8x128xf32, #tpu.memory_space<vmem>>, vector<1x8x128xf32>
    %25 = vector.shape_cast %24 : vector<1x8x128xf32> to vector<8x128xf32>
    %26 = vector.shape_cast %23 : vector<8x128xf32> to vector<1x8x128xf32>
    tpu.vector_store %arg4[%c0_10, %c0_11, %c0_12], %26 {strides = array<i32>} : memref<1x8x128xf32, #tpu.memory_space<vmem>>, vector<1x8x128xf32>,
    return
  }
  func.func @transform_0(%arg0: i32) -> (i32, i32) {
    %c0_i32 = arith.constant 0 : i32
    %c0_i32_0 = arith.constant 0 : i32
    return %arg0, %c0_i32 : i32, i32
  }
  func.func @transform_1(%arg0: i32) -> (i32, i32) {
    %c0_i32 = arith.constant 0 : i32
    %c0_i32_0 = arith.constant 0 : i32
    return %arg0, %c0_i32 : i32, i32
  }
  func.func @transform_2(%arg0: i32) -> (i32, i32) {
    %c0_i32 = arith.constant 0 : i32
    %c0_i32_0 = arith.constant 0 : i32
    return %arg0, %c0_i32 : i32, i32
  }
  func.func @transform_3(%arg0: i32) -> (i32, i32, i32) {
    %c0_i32 = arith.constant 0 : i32
    %c0_i32_0 = arith.constant 0 : i32
    %c0_i32_1 = arith.constant 0 : i32
    return %arg0, %c0_i32, %c0_i32_0 : i32, i32, i32
  }
}

</mosaic_0001>

<bundles_post_ra>
// kernel: tpu_custom_call.1
= control target key start
LH: loop header
LB: loop body
LE: loop exit
PB: predicated region body
PF: predicated region fallthrough
CT: control target
= control target key end

     0   :  { %8 = vsyncpa [#allocation3], 0  ;;  %s303_s0 = inlined_call_operand.hbm [shape: f32[16,128], index: 0, kind: input, shape index: {}]   ;;  %s304_s1 = inlined_call_operand.hbm [shape: f32[16,128], index: 1, kind: input, shape index: {}]   ;;  %s305_s2 = inlined_call_operand.hbm [shape: f32[16,128], index: 2, kind: input, shape index: {}]   ;;  %s306_s3 = inlined_call_operand.hbm [shape: f32[1,8,128], index: 3, kind: output, shape index: {}]  }
   0x1   :  { %9 = vsyncpa [#allocation6], 0 }
   0x2   :  { %10 = vsyncpa [#allocation4], 0  ;;  %s213_s12 = smov [#allocation5]   ;;  %s214_s14 = smov [#allocation2]  }
   0x3   :  { %s28_s13 = sshll.u32 %s213_s12, 4  ;;  %s16_s15 = sshll.u32 %s214_s14, 4  ;;  %s29_s13 = int_to_ptr.vmem [resolvable:$true] %s28_s13  ;;  %s239_s15 = int_to_ptr.vmem [resolvable:$true] %s16_s15 }
   0x4   :  { %s119_s18 = scalar_lea.hbm %s304_s1, 256 }
   0x5   :  { %p120_p0 = scmp.ne.s32.totalorder %s304_s1, %s119_s18  ;;  %p123_p1 = scmp.lt.u32.totalorder %s119_s18, %s304_s1 }
   0x7   :  { %p125_p2 = pnand %p123_p1, %p120_p0 }
   0x9   :  { %128 = shalt.err (!%p125_p2)
}
   0xa   :  { %s129_s23 = scalar_lea.vmem %s29_s13, 256  ;;  %p134_p4 = scmp.lt.s32.totalorder %s29_s13, %s29_s13 }
   0xb   :  { %p130_p3 = scmp.ne.s32.totalorder %s29_s13, %s129_s23  ;;  %p135_p5 = scmp.lt.s32.totalorder %s129_s23, %s129_s23 }
   0xd   :  { %p136_p6 = por %p135_p5, %p134_p4 }
   0xf   :  { %p137_p7 = pnand %p136_p6, %p130_p3 }
  0x11   :  { %140 = shalt.err (!%p137_p7)
}
  0x12   :  { %s215_s24 = smov 128   ;;  %s216_s25 = smov 8  }
  0x13   :  { %34 = dma.hbm_to_vmem [thread:$0]  %s304_s1, 256, %s29_s13, [#allocation6], %s215_s24, %s215_s24, %s216_s25  }
  0x14   :  { %s141_s30 = scalar_lea.hbm %s303_s0, 256 }
  0x15   :  { %p142_p8 = scmp.ne.s32.totalorder %s303_s0, %s141_s30  ;;  %p145_p9 = scmp.lt.u32.totalorder %s141_s30, %s303_s0 }
  0x17   :  { %p147_p10 = pnand %p145_p9, %p142_p8 }
  0x19   :  { %150 = shalt.err (!%p147_p10)
}
  0x1a   :  { %s151_s8 = scalar_lea.vmem %s239_s15, 256  ;;  %p156_p12 = scmp.lt.s32.totalorder %s239_s15, %s239_s15 }
  0x1b   :  { %p152_p11 = scmp.ne.s32.totalorder %s239_s15, %s151_s8  ;;  %p157_p13 = scmp.lt.s32.totalorder %s151_s8, %s151_s8 }
  0x1d   :  { %p158_p0 = por %p157_p13, %p156_p12 }
  0x1f   :  { %p159_p1 = pnand %p158_p0, %p152_p11 }
  0x21   :  { %162 = shalt.err (!%p159_p1)
}
  0x22   :  { %22 = dma.hbm_to_vmem [thread:$0]  %s303_s0, 256, %s239_s15, [#allocation3], %s215_s24, %s215_s24, %s216_s25  }
  0x23   :  { %s217_s10 = smov [#allocation7]   ;;  %s163_s14 = scalar_lea.hbm %s305_s2, 256 }
  0x24   :  { %s40_s11 = sshll.u32 %s217_s10, 4  ;;  %p164_p2 = scmp.ne.s32.totalorder %s305_s2, %s163_s14  ;;  %s41_s11 = int_to_ptr.vmem [resolvable:$true] %s40_s11 }
  0x25   :  { %p167_p3 = scmp.lt.u32.totalorder %s163_s14, %s305_s2 }
  0x27   :  { %p169_p4 = pnand %p167_p3, %p164_p2 }
  0x29   :  { %172 = shalt.err (!%p169_p4)
}
  0x2a   :  { %s173_s20 = scalar_lea.vmem %s41_s11, 256  ;;  %p178_p6 = scmp.lt.s32.totalorder %s41_s11, %s41_s11 }
  0x2b   :  { %p174_p5 = scmp.ne.s32.totalorder %s41_s11, %s173_s20  ;;  %p179_p7 = scmp.lt.s32.totalorder %s173_s20, %s173_s20 }
  0x2d   :  { %p180_p8 = por %p179_p7, %p178_p6 }
  0x2f   :  { %p181_p9 = pnand %p180_p8, %p174_p5 }
  0x31   :  { %184 = shalt.err (!%p181_p9)
}
  0x32   :  { %46 = dma.hbm_to_vmem [thread:$0]  %s305_s2, 256, %s41_s11, [#allocation6], %s215_s24, %s215_s24, %s216_s25  }
  0x33   :  { %207 = dma.done.wait [#allocation3], 256  }
  0x34   :  { %208 = vsyncadd [#allocation3], 4294967040 }
  0x35   :  { %209 = dma.done.wait [#allocation6], 512  }
  0x36   :  { %210 = vsyncadd [#allocation6], 4294966784  ;;  %v56_v0 = vld [vmem:[#allocation2] sm:$0xff]  ;;  %v57_v1 = vld [vmem:[#allocation2 + $0x8] sm:$0xff]  ;;  %s218_s2 = smov [#allocation8]  }
  0x37   :  { %v64_v2 = vsub.f32 1.0, %v56_v0  ;;  %v60_v3 = vld [vmem:[#allocation7] sm:$0xff]  ;;  %v65_v4 = vsub.f32 1.0, %v57_v1  ;;  %v72_v5 = vadd.f32 0.0001, %v56_v0  ;;  %v61_v7 = vld [vmem:[#allocation7 + $0x8] sm:$0xff] }
  0x38   :  { %v73_v6 = vadd.f32 0.0001, %v57_v1  ;;  %v62_v8 = vsub.f32 0.0, %v60_v3  ;;  %v63_v10 = vsub.f32 0.0, %v61_v7  ;;  %v58_v13 = vld [vmem:[#allocation5] sm:$0xff]  ;;  %v59_v15 = vld [vmem:[#allocation5 + $0x8] sm:$0xff] }
  0x39   :  { %115 = vlog2.f32 %v72_v5  ;;  %v66_v9 = vmul.f32 %v64_v2, %v64_v2  ;;  %v67_v11 = vmul.f32 %v65_v4, %v65_v4  ;;  %s99_s21 = sshll.u32 %s218_s2, 4  ;;  %s100_s21 = int_to_ptr.vmem [resolvable:$true] %s99_s21 }
  0x3a   :  { %117 = vlog2.f32 %v73_v6  ;;  %s185_s22 = scalar_lea.vmem %s100_s21, 128  ;;  %p190_p11 = scmp.lt.s32.totalorder %s100_s21, %s100_s21 }
  0x3b   :  { %v68_v12 = vmul.f32 %v66_v9, %v62_v8  ;;  %v69_v14 = vmul.f32 %v67_v11, %v63_v10  ;;  %p186_p10 = scmp.ne.s32.totalorder %s100_s21, %s185_s22  ;;  %p191_p12 = scmp.lt.s32.totalorder %s185_s22, %s185_s22 }
  0x3d   :  { %v70_v16 = vmul.f32 %v68_v12, %v58_v13  ;;  %v71_v18 = vmul.f32 %v69_v14, %v59_v15  ;;  %p192_p13 = por %p191_p12, %p190_p11 }
  0x3f   :  { %p193_p0 = pnand %p192_p13, %p186_p10 }
  0x43   :  { %v116_v17 = vpop.eup %115 }
  0x44   :  { %v118_v19 = vpop.eup %117  ;;  %v75_v20 = vmul.f32 0.6931472, %v116_v17 }
  0x45   :  { %v77_v21 = vmul.f32 0.6931472, %v118_v19 }
  0x46   :  { %v78_v22 = vmul.f32 %v75_v20, %v70_v16 }
  0x47   :  { %v79_v23 = vmul.f32 %v77_v21, %v71_v18 }
  0x49   :  { %v91_v24 = vadd.f32 %v79_v23, %v78_v22 }
  0x4b   :  { %92 = vst [vmem:[#allocation8] sm:$0xff] %v91_v24 }
  0x4c   :  { %196 = shalt.err (!%p193_p0)
}
  0x4d   :  { %s197_s25 = scalar_lea.hbm %s306_s3, 128 }
  0x4e   :  { %p198_p1 = scmp.ne.s32.totalorder %s306_s3, %s197_s25  ;;  %p201_p2 = scmp.lt.u32.totalorder %s197_s25, %s306_s3 }
  0x50   :  { %p203_p3 = pnand %p201_p2, %p198_p1 }
  0x52   :  { %206 = shalt.err (!%p203_p3)
}
  0x53   :  { %102 = dma.vmem_to_hbm [thread:$0]  %s100_s21, 128, %s306_s3, [#allocation4]  }
  0x54   :  { %211 = dma.done.wait [#allocation4], 128  }
  0x55   :  { %212 = vsyncadd [#allocation4], 4294967168 }
  0x56   :  { %106 = vsyncpa [#allocation3], 1 }
  0x57   :  { %107 = vsyncpa [#allocation6], 1 }
  0x58   :  { %108 = vsyncpa [#allocation4], 1 }

</bundles_post_ra>
